<compile_context>
chip_gen: v7x
topology: tpu7x:2x2x1
jax: 0.10.0
libtpu: 0.0.40
codegen_flags: <defaults>
</compile_context>

<pallas_src>
import jax
import jax.numpy as jnp
from jax import lax
from jax.experimental import pallas as pl
from jax.experimental.pallas import tpu as pltpu


# ============================================================================
# Kernels
# ============================================================================

def _head(y, w1_ref, b1_ref, w2_ref, b2):
    """Shared tail: MaxPool1d(2,2) + linear1 + ReLU + linear2 + sigmoid.

    `y` is the [8D, T] f32 conv response; rows [0, 4D) are the even conv taps,
    rows [4D, 8D) the odd taps, both already in channel-major (torch-flatten)
    order, so the pool is a single aligned maximum and no row selection/shuffle
    is needed afterwards.
    """
    half = y.shape[0] // 2
    m = jnp.maximum(y[:half, :], y[half:, :])                      # [4D, T] f32
    h = jnp.dot(w1_ref[...], m.astype(w1_ref.dtype),
                preferred_element_type=jnp.float32) + b1_ref[...]  # [H, T]
    h = jnp.maximum(h, 0.0)
    # linear2 on the MXU; w2 is zero-padded to 8 rows wrapper-side (row 0 real).
    logit = jnp.dot(w2_ref[...], h.astype(w2_ref.dtype),
                    preferred_element_type=jnp.float32)[0:1, :] + b2   # [1, T]
    return 1.0 / (1.0 + jnp.exp(-logit))                           # [1, T] f32


def _decoder_kernel_gathered(b2_ref,                                # SMEM
                             x1_ref, x2_ref, a1_ref, a2_ref,        # VMEM
                             w1_ref, b1_ref, w2_ref,
                             out_ref):
    """Pre-gathered path: x1/x2 tiles are [D, T] bf16 (edges on the lane axis).

    Conv1d(1->4, k=3, pad=1) is one banded-matrix MXU matmul per endpoint
    (a1/a2 are [8D, D]); there is no per-channel VPU shift/FMA loop.
    """
    y = (jnp.dot(a1_ref[...], x1_ref[...], preferred_element_type=jnp.float32)
         + jnp.dot(a2_ref[...], x2_ref[...], preferred_element_type=jnp.float32))
    out_ref[...] = _head(y, w1_ref, b1_ref, w2_ref, b2_ref[0]).astype(out_ref.dtype)


def _decoder_kernel_fused(b2_ref,                                   # SMEM
                          idx_ref, bs1_ref, bs2_ref,                # VMEM
                          w1_ref, b1_ref, w2_ref,
                          out_ref):
    """Fused-gather path (small node tables resident in VMEM).

    idx_ref: [2, T] int32 edge endpoints.  bs1/bs2: [8D, Npad] conv-folded node
    table (Bs = A_band @ x^T).  The gather is a one-hot MXU matmul, so the
    [E, 2D] edge features never exist in HBM.
    """
    idx = idx_ref[...]                                              # [2, T] int32
    n_pad = bs1_ref.shape[1]
    t = idx.shape[1]
    node_ids = lax.broadcasted_iota(jnp.int32, (n_pad, t), 0)       # [Npad, T]
    oh1 = jnp.where(node_ids == idx[0:1, :], 1.0, 0.0).astype(bs1_ref.dtype)
    oh2 = jnp.where(node_ids == idx[1:2, :], 1.0, 0.0).astype(bs2_ref.dtype)
    y = (jnp.dot(bs1_ref[...], oh1, preferred_element_type=jnp.float32)
         + jnp.dot(bs2_ref[...], oh2, preferred_element_type=jnp.float32))
    out_ref[...] = _head(y, w1_ref, b1_ref, w2_ref, b2_ref[0]).astype(out_ref.dtype)


# ============================================================================
# Wrapper
# ============================================================================

def _build_conv_matrices(cw, D):
    """Banded Conv1d(1->4, k=3, pad=1) matrices with pool/flatten row ordering.

    Returns a1, a2 of shape [8D, D] such that y = a1 @ x1^T + a2 @ x2^T holds,
    per edge column, rows [0, 4D) = conv taps at positions 2p and rows
    [4D, 8D) = taps at 2p+1, both in channel-major order q = c*D + p.  The
    MaxPool1d(2,2) + flatten therefore becomes max(top half, bottom half) with
    no shifts, and linear1 applies with its original [H, 4D] weight.
    """
    L = 2 * D
    t = jnp.arange(L)[:, None]
    s = jnp.arange(L)[None, :]
    a_full = jnp.zeros((4, L, L), jnp.float32)
    for k in range(3):                     # y[c, t] = sum_k cw[c, k] * xc[t-1+k]
        band = (s == (t - 1 + k)).astype(jnp.float32)   # zero padding implicit
        a_full = a_full + cw[:, k][:, None, None] * band[None, :, :]
    a_even = a_full[:, 0::2, :].reshape(4 * D, L)       # taps 2p   (channel-major)
    a_odd = a_full[:, 1::2, :].reshape(4 * D, L)        # taps 2p+1
    a_stack = jnp.concatenate([a_even, a_odd], axis=0)  # [8D, 2D]
    return a_stack[:, :D], a_stack[:, D:]


def _pick_tile_and_vmem(n_edges):
    """Generation-aware tile width / scoped-VMEM budget (v7x: 64 MiB per core)."""
    try:
        vmem = pltpu.get_tpu_info().vmem_capacity_bytes
    except Exception:
        vmem = 64 * 1024 * 1024
    if vmem >= 100 * 1024 * 1024:          # v5e / v6e: 128 MiB VMEM
        tile_e, budget = 16384, 48 * 1024 * 1024
    else:                                  # v7x (or unknown): stay conservative
        tile_e, budget = 8192, 40 * 1024 * 1024
    tile_e = min(tile_e, max(128, ((n_edges + 127) // 128) * 128))
    return tile_e, budget


def graph_pre_decoder_forward(x, index, params, *, tile_e=None,
                              vmem_limit_bytes=None, fuse_gather=None):
    """x: [N, D] float, index: [2, E] int  ->  sigmoid scores [E] float32."""
    x = x.astype(jnp.float32)
    N, D = x.shape
    H = params["w1"].shape[0]                        # hidden width (64)
    E = index.shape[1]

    if tile_e is None or vmem_limit_bytes is None:
        auto_tile, auto_vmem = _pick_tile_and_vmem(E)
        tile_e = auto_tile if tile_e is None else tile_e
        vmem_limit_bytes = auto_vmem if vmem_limit_bytes is None else vmem_limit_bytes
    assert tile_e % 128 == 0, "tile_e must be a multiple of 128 (lane width)"

    # Pad the tiny int32 index BEFORE any gather so the [D, E] feature arrays
    # never get re-padded / copied through HBM.  Node 0 is a valid row; the
    # padded tail is sliced off at the end.
    n_tiles = pl.cdiv(E, tile_e)
    e_pad = n_tiles * tile_e
    index = index.astype(jnp.int32)
    if e_pad != E:
        index = jnp.pad(index, ((0, 0), (0, e_pad - E)))

    # ---- weight prep (wrapper-side, runs once) -------------------------------
    cdt = jnp.bfloat16                               # MXU compute dtype
    a1, a2 = _build_conv_matrices(params["cw"].astype(jnp.float32), D)   # [8D, D]
    w1 = params["w1"].astype(jnp.float32)                                # [H, 4D]
    # Conv bias folded exactly into the linear1 bias (a per-channel constant
    # commutes with the max-pool):  b1' = b1 + (sum_p W1[:, c*D+p]) @ cb.
    b1p = (params["b1"].astype(jnp.float32)
           + w1.reshape(H, 4, D).sum(axis=2) @ params["cb"].astype(jnp.float32)
           ).reshape(H, 1)
    # linear2 weight padded to 8 rows (row 0 real) -> aligned MXU matmul instead
    # of a cross-sublane VPU reduction.
    w2p = jnp.zeros((8, H), jnp.float32).at[0, :].set(
        params["w2"].astype(jnp.float32).reshape(H))
    b2 = params["b2"].astype(jnp.float32).reshape(1)

    a1c, a2c = a1.astype(cdt), a2.astype(cdt)
    w1c, w2c = w1.astype(cdt), w2p.astype(cdt)

    if fuse_gather is None:
        fuse_gather = N <= 128                       # node table must stay small

    compiler_params = pltpu.CompilerParams(
        dimension_semantics=("parallel",),           # megacore sharding on v7x
        vmem_limit_bytes=vmem_limit_bytes)
    out_shape = jax.ShapeDtypeStruct((1, e_pad), jnp.float32)
    out_spec = pl.BlockSpec((1, tile_e), lambda i: (0, i))
    smem_spec = pl.BlockSpec(memory_space=pltpu.MemorySpace.SMEM)

    if fuse_gather:
        # Fold the conv into the node table once per node:  Bs = A_band @ x^T.
        n_pad = max(8, ((N + 7) // 8) * 8)
        xt = jnp.zeros((D, n_pad), jnp.float32).at[:, :N].set(x.T)
        bs1 = (a1 @ xt).astype(cdt)                  # [8D, Npad]
        bs2 = (a2 @ xt).astype(cdt)
        out = pl.pallas_call(
            _decoder_kernel_fused,
            out_shape=out_shape,
            grid=(n_tiles,),
            in_specs=[
                smem_spec,                                        # b2 [1]
                pl.BlockSpec((2, tile_e), lambda i: (0, i)),      # index tile
                pl.BlockSpec((8 * D, n_pad), lambda i: (0, 0)),   # Bs1 (resident)
                pl.BlockSpec((8 * D, n_pad), lambda i: (0, 0)),   # Bs2 (resident)
                pl.BlockSpec((H, 4 * D), lambda i: (0, 0)),       # W1
                pl.BlockSpec((H, 1), lambda i: (0, 0)),           # b1'
                pl.BlockSpec((8, H), lambda i: (0, 0)),           # W2 (padded)
            ],
            out_specs=out_spec,
            compiler_params=compiler_params,
        )(b2, index, bs1, bs2, w1c, b1p, w2c)
    else:
        # General (large-N) path: gather wrapper-side in bf16 and stream tiles.
        xb = x.astype(cdt)
        x1t = jnp.take(xb, index[0], axis=0).T       # [D, e_pad] bf16
        x2t = jnp.take(xb, index[1], axis=0).T
        out = pl.pallas_call(
            _decoder_kernel_gathered,
            out_shape=out_shape,
            grid=(n_tiles,),
            in_specs=[
                smem_spec,                                        # b2 [1]
                pl.BlockSpec((D, tile_e), lambda i: (0, i)),      # x1^T tile
                pl.BlockSpec((D, tile_e), lambda i: (0, i)),      # x2^T tile
                pl.BlockSpec((8 * D, D), lambda i: (0, 0)),       # conv band A1
                pl.BlockSpec((8 * D, D), lambda i: (0, 0)),       # conv band A2
                pl.BlockSpec((H, 4 * D), lambda i: (0, 0)),       # W1
                pl.BlockSpec((H, 1), lambda i: (0, 0)),           # b1'
                pl.BlockSpec((8, H), lambda i: (0, 0)),           # W2 (padded)
            ],
            out_specs=out_spec,
            compiler_params=compiler_params,
        )(b2, x1t, x2t, a1c, a2c, w1c, b1p, w2c)

    # TODO(synk): F.dropout(x, 0.1) (train-mode functional dropout) is treated
    # as identity -- this is the inference forward.
    return out.reshape(-1)[:E]


# ============================================================================
# Parameters / reference / test
# ============================================================================

def init_params(key, in_dim, hidden=64):
    """Deterministic synthetic parameters matching the module's shapes."""
    k = jax.random.split(key, 6)
    u = lambda kk, shape, bound: jax.random.uniform(
        kk, shape, jnp.float32, minval=-bound, maxval=bound)
    return {
        # Conv1d(1, 4, k=3): weight [4,1,3] squeezed to [4,3], bias [4]
        "cw": u(k[0], (4, 3), (1.0 / 3.0) ** 0.5),
        "cb": u(k[1], (4,), (1.0 / 3.0) ** 0.5),
        # Linear(4*in_dim, 64): torch layout [64, 4*in_dim], bias [64]
        "w1": u(k[2], (hidden, 4 * in_dim), (1.0 / (4 * in_dim)) ** 0.5),
        "b1": u(k[3], (hidden,), (1.0 / (4 * in_dim)) ** 0.5),
        # Linear(64, 1): weight [1, 64], bias [1]
        "w2": u(k[4], (1, hidden), (1.0 / hidden) ** 0.5),
        "b2": u(k[5], (1,), (1.0 / hidden) ** 0.5),
    }


def reference_forward(x, index, p):
    """Pure-JAX f32 reference mirroring the PyTorch forward (dropout = identity)."""
    xc = jnp.concatenate([x[index[0]], x[index[1]]], axis=-1)     # [E, 2D]
    E, L = xc.shape
    xp = jnp.pad(xc, ((0, 0), (1, 1)))
    chans = []
    for c in range(4):
        y = (p["cw"][c, 0] * xp[:, :-2] + p["cw"][c, 1] * xp[:, 1:-1]
             + p["cw"][c, 2] * xp[:, 2:] + p["cb"][c])
        chans.append(jnp.max(y.reshape(E, L // 2, 2), axis=-1))
    feat = jnp.concatenate(chans, axis=-1)                        # [E, 4D]
    h = jnp.maximum(feat @ p["w1"].T + p["b1"], 0.0)
    logit = h @ p["w2"][0] + p["b2"][0]
    return jax.nn.sigmoid(logit)


if __name__ == "__main__":
    key = jax.random.PRNGKey(0)
    k_param, k_x, k_idx = jax.random.split(key, 3)

    in_dim = 16        # node feature dim (linear1 expects 4*in_dim = 64)
    n_nodes = 10
    n_edges = 300      # not a multiple of the tile -> exercises multi-tile + padding

    params = init_params(k_param, in_dim)
    x = jax.random.normal(k_x, (n_nodes, in_dim), dtype=jnp.float32)
    index = jax.random.randint(k_idx, (2, n_edges), 0, n_nodes, dtype=jnp.int32)

    ref = reference_forward(x, index, params)

    # Fused-gather path (node table resident in VMEM; edge features never hit HBM).
    out_fused = graph_pre_decoder_forward(x, index, params, tile_e=256)
    out_fused = jax.block_until_ready(out_fused)
    assert out_fused.shape == (n_edges,)
    assert jnp.allclose(out_fused, ref, atol=2e-2, rtol=2e-2), (
        float(jnp.max(jnp.abs(out_fused - ref))))

    # Pre-gathered streaming path (the general large-N path).
    out_gath = graph_pre_decoder_forward(x, index, params, tile_e=256,
                                         fuse_gather=False)
    out_gath = jax.block_until_ready(out_gath)
    assert out_gath.shape == (n_edges,)
    assert jnp.allclose(out_gath, ref, atol=2e-2, rtol=2e-2), (
        float(jnp.max(jnp.abs(out_gath - ref))))

    print("KERNEL_OK")
</pallas_src>

<mosaic_0001>
module attributes {stable_mosaic.version = 11 : i64} {
  func.func @_decoder_kernel_fused(%arg0: i32, %arg1: memref<1xf32, #tpu.memory_space<smem>>, %arg2: memref<2x256xi32, #tpu.memory_space<vmem>>, %arg3: memref<128x16xbf16, #tpu.memory_space<vmem>>, %arg4: memref<128x16xbf16, #tpu.memory_space<vmem>>, %arg5: memref<64x64xbf16, #tpu.memory_space<vmem>>, %arg6: memref<64x1xf32, #tpu.memory_space<vmem>>, %arg7: memref<8x64xbf16, #tpu.memory_space<vmem>>, %arg8: memref<1x256xf32, #tpu.memory_space<vmem>>) attributes {dimension_semantics = [#tpu.dimension_semantics<parallel>], iteration_bounds = array<i64: 2>, scalar_prefetch = 0 : i64, scratch_operands = 0 : i64, tpu.core_type = #tpu.core_type<tc>, window_params = [{transform_indices = @transform_0, window_bounds = array<i64: 1>}, {transform_indices = @transform_1, window_bounds = array<i64: 2, 256>}, {pipeline_mode = #tpu.pipeline_mode<synchronous>, transform_indices = @transform_2, window_bounds = array<i64: 128, 16>}, {pipeline_mode = #tpu.pipeline_mode<synchronous>, transform_indices = @transform_3, window_bounds = array<i64: 128, 16>}, {pipeline_mode = #tpu.pipeline_mode<synchronous>, transform_indices = @transform_4, window_bounds = array<i64: 64, 64>}, {pipeline_mode = #tpu.pipeline_mode<synchronous>, transform_indices = @transform_5, window_bounds = array<i64: 64, 1>}, {pipeline_mode = #tpu.pipeline_mode<synchronous>, transform_indices = @transform_6, window_bounds = array<i64: 8, 64>}, {transform_indices = @transform_7, window_bounds = array<i64: 1, 256>}]} {
    %c0 = arith.constant 0 : index
    %c0_0 = arith.constant 0 : index
    %0 = vector.load %arg2[%c0, %c0_0] : memref<2x256xi32, #tpu.memory_space<vmem>>, vector<2x256xi32>
    %1 = tpu.iota {dimensions = array<i32: 0>} : vector<16x256xi32>
    %2 = vector.extract_strided_slice %0 {offsets = [0, 0], sizes = [1, 256], strides = [1, 1]} : vector<2x256xi32> to vector<1x256xi32>
    %3 = vector.broadcast %2 : vector<1x256xi32> to vector<16x256xi32>
    %4 = arith.cmpi eq, %1, %3 : vector<16x256xi32>
    %cst = arith.constant 1.000000e+00 : f32
    %cst_1 = arith.constant 0.000000e+00 : f32
    %5 = vector.broadcast %cst : f32 to vector<16x256xf32>
    %6 = vector.broadcast %cst_1 : f32 to vector<16x256xf32>
    %7 = arith.select %4, %5, %6 : vector<16x256xi1>, vector<16x256xf32>
    %8 = arith.truncf %7 : vector<16x256xf32> to vector<16x256xbf16>
    %9 = vector.extract_strided_slice %0 {offsets = [1, 0], sizes = [1, 256], strides = [1, 1]} : vector<2x256xi32> to vector<1x256xi32>
    %10 = vector.broadcast %9 : vector<1x256xi32> to vector<16x256xi32>
    %11 = arith.cmpi eq, %1, %10 : vector<16x256xi32>
    %cst_2 = arith.constant 1.000000e+00 : f32
    %cst_3 = arith.constant 0.000000e+00 : f32
    %12 = vector.broadcast %cst_2 : f32 to vector<16x256xf32>
    %13 = vector.broadcast %cst_3 : f32 to vector<16x256xf32>
    %14 = arith.select %11, %12, %13 : vector<16x256xi1>, vector<16x256xf32>
    %15 = arith.truncf %14 : vector<16x256xf32> to vector<16x256xbf16>
    %c0_4 = arith.constant 0 : index
    %c0_5 = arith.constant 0 : index
    %16 = vector.load %arg3[%c0_4, %c0_5] : memref<128x16xbf16, #tpu.memory_space<vmem>>, vector<128x16xbf16>
    %cst_6 = arith.constant dense<0.000000e+00> : vector<128x256xf32>
    %17 = tpu.matmul %16, %8, %cst_6 {dimension_numbers = #tpu.dot_dimension_numbers<[1], [0], [0], [1], [0, 0, 1, 1], [], []>} : vector<128x16xbf16>, vector<16x256xbf16>, vector<128x256xf32> -> vector<128x256xf32>
    %c0_7 = arith.constant 0 : index
    %c0_8 = arith.constant 0 : index
    %18 = vector.load %arg4[%c0_7, %c0_8] : memref<128x16xbf16, #tpu.memory_space<vmem>>, vector<128x16xbf16>
    %cst_9 = arith.constant dense<0.000000e+00> : vector<128x256xf32>
    %19 = tpu.matmul %18, %15, %cst_9 {dimension_numbers = #tpu.dot_dimension_numbers<[1], [0], [0], [1], [0, 0, 1, 1], [], []>} : vector<128x16xbf16>, vector<16x256xbf16>, vector<128x256xf32> -> vector<128x256xf32>
    %20 = arith.addf %17, %19 : vector<128x256xf32>
    %c0_10 = arith.constant 0 : index
    %21 = memref.load %arg1[%c0_10] : memref<1xf32, #tpu.memory_space<smem>>
    %22 = vector.extract_strided_slice %20 {offsets = [0, 0], sizes = [64, 256], strides = [1, 1]} : vector<128x256xf32> to vector<64x256xf32>
    %23 = vector.extract_strided_slice %20 {offsets = [64, 0], sizes = [64, 256], strides = [1, 1]} : vector<128x256xf32> to vector<64x256xf32>
    %24 = arith.maximumf %22, %23 : vector<64x256xf32>
    %c0_11 = arith.constant 0 : index
    %c0_12 = arith.constant 0 : index
    %25 = vector.load %arg5[%c0_11, %c0_12] : memref<64x64xbf16, #tpu.memory_space<vmem>>, vector<64x64xbf16>
    %26 = arith.truncf %24 : vector<64x256xf32> to vector<64x256xbf16>
    %cst_13 = arith.constant dense<0.000000e+00> : vector<64x256xf32>
    %27 = tpu.matmul %25, %26, %cst_13 {dimension_numbers = #tpu.dot_dimension_numbers<[1], [0], [0], [1], [0, 0, 1, 1], [], []>} : vector<64x64xbf16>, vector<64x256xbf16>, vector<64x256xf32> -> vector<64x256xf32>
    %c0_14 = arith.constant 0 : index
    %c0_15 = arith.constant 0 : index
    %28 = vector.load %arg6[%c0_14, %c0_15] : memref<64x1xf32, #tpu.memory_space<vmem>>, vector<64x1xf32>
    %29 = vector.broadcast %28 : vector<64x1xf32> to vector<64x256xf32>
    %30 = arith.addf %27, %29 : vector<64x256xf32>
    %cst_16 = arith.constant 0.000000e+00 : f32
    %31 = vector.broadcast %cst_16 : f32 to vector<64x256xf32>
    %32 = arith.maximumf %30, %31 : vector<64x256xf32>
    %c0_17 = arith.constant 0 : index
    %c0_18 = arith.constant 0 : index
    %33 = vector.load %arg7[%c0_17, %c0_18] : memref<8x64xbf16, #tpu.memory_space<vmem>>, vector<8x64xbf16>
    %34 = arith.truncf %32 : vector<64x256xf32> to vector<64x256xbf16>
    %cst_19 = arith.constant dense<0.000000e+00> : vector<8x256xf32>
    %35 = tpu.matmul %33, %34, %cst_19 {dimension_numbers = #tpu.dot_dimension_numbers<[1], [0], [0], [1], [0, 0, 1, 1], [], []>} : vector<8x64xbf16>, vector<64x256xbf16>, vector<8x256xf32> -> vector<8x256xf32>
    %36 = vector.extract_strided_slice %35 {offsets = [0, 0], sizes = [1, 256], strides = [1, 1]} : vector<8x256xf32> to vector<1x256xf32>
    %37 = vector.broadcast %21 : f32 to vector<1x256xf32>
    %38 = arith.addf %36, %37 : vector<1x256xf32>
    %cst_20 = arith.constant 0.000000e+00 : f32
    %39 = vector.broadcast %cst_20 : f32 to vector<1x256xf32>
    %40 = arith.subf %39, %38 : vector<1x256xf32>
    %41 = math.exp %40 : vector<1x256xf32>
    %cst_21 = arith.constant 1.000000e+00 : f32
    %42 = vector.broadcast %cst_21 : f32 to vector<1x256xf32>
    %43 = arith.addf %42, %41 : vector<1x256xf32>
    %cst_22 = arith.constant 1.000000e+00 : f32
    %44 = vector.broadcast %cst_22 : f32 to vector<1x256xf32>
    %45 = arith.divf %44, %43 : vector<1x256xf32>
    %c0_23 = arith.constant 0 : index
    %c0_24 = arith.constant 0 : index
    %46 = vector.load %arg8[%c0_23, %c0_24] : memref<1x256xf32, #tpu.memory_space<vmem>>, vector<1x256xf32>
    tpu.vector_store %arg8[%c0_23, %c0_24], %45 {strides = array<i32>} : memref<1x256xf32, #tpu.memory_space<vmem>>, vector<1x256xf32>,
    return
  }
  func.func @transform_0(%arg0: i32) -> i32 {
    %c0_i32 = arith.constant 0 : i32
    %c0_i32_0 = arith.constant 0 : i32
    return %c0_i32 : i32
  }
  func.func @transform_1(%arg0: i32) -> (i32, i32) {
    %c0_i32 = arith.constant 0 : i32
    %c0_i32_0 = arith.constant 0 : i32
    return %c0_i32, %arg0 : i32, i32
  }
  func.func @transform_2(%arg0: i32) -> (i32, i32) {
    %c0_i32 = arith.constant 0 : i32
    %c0_i32_0 = arith.constant 0 : i32
    %c0_i32_1 = arith.constant 0 : i32
    return %c0_i32, %c0_i32_0 : i32, i32
  }
  func.func @transform_3(%arg0: i32) -> (i32, i32) {
    %c0_i32 = arith.constant 0 : i32
    %c0_i32_0 = arith.constant 0 : i32
    %c0_i32_1 = arith.constant 0 : i32
    return %c0_i32, %c0_i32_0 : i32, i32
  }
  func.func @transform_4(%arg0: i32) -> (i32, i32) {
    %c0_i32 = arith.constant 0 : i32
    %c0_i32_0 = arith.constant 0 : i32
    %c0_i32_1 = arith.constant 0 : i32
    return %c0_i32, %c0_i32_0 : i32, i32
  }
  func.func @transform_5(%arg0: i32) -> (i32, i32) {
    %c0_i32 = arith.constant 0 : i32
    %c0_i32_0 = arith.constant 0 : i32
    %c0_i32_1 = arith.constant 0 : i32
    return %c0_i32, %c0_i32_0 : i32, i32
  }
  func.func @transform_6(%arg0: i32) -> (i32, i32) {
    %c0_i32 = arith.constant 0 : i32
    %c0_i32_0 = arith.constant 0 : i32
    %c0_i32_1 = arith.constant 0 : i32
    return %c0_i32, %c0_i32_0 : i32, i32
  }
  func.func @transform_7(%arg0: i32) -> (i32, i32) {
    %c0_i32 = arith.constant 0 : i32
    %c0_i32_0 = arith.constant 0 : i32
    return %c0_i32, %arg0 : i32, i32
  }
}

</mosaic_0001>

<bundles_post_ra>
// kernel: tpu_custom_call.1
= control target key start
LH: loop header
LB: loop body
LE: loop exit
PB: predicated region body
PF: predicated region fallthrough
CT: control target
= control target key end

     0   :  { %s1640_s0 = inlined_call_operand.<no memory space> [shape: f32[1], index: 0, kind: input, shape index: {}]   ;;  %s1641_s1 = inlined_call_operand.vmem [shape: s32[2,512], index: 1, kind: input, shape index: {}]   ;;  %s1642_s2 = inlined_call_operand.vmem [shape: bf16[128,16], index: 2, kind: input, shape index: {}]   ;;  %s1643_s3 = inlined_call_operand.vmem [shape: bf16[128,16], index: 3, kind: input, shape index: {}]   ;;  %s1644_s4 = inlined_call_operand.vmem [shape: bf16[64,64], index: 4, kind: input, shape index: {}]   ;;  %s1645_s5 = inlined_call_operand.vmem [shape: f32[64,1], index: 5, kind: input, shape index: {}]   ;;  %s1646_s6 = inlined_call_operand.vmem [shape: bf16[8,64], index: 6, kind: input, shape index: {}]   ;;  %s1647_s7 = inlined_call_operand.hbm [shape: f32[1,512], index: 7, kind: output, shape index: {}]  }
   0x1   :  { %12 = sst [smem:[#allocation2]] %s1640_s0 }
   0x2   :  { %13 = vsyncpa [#allocation4], 0 }
   0x3   :  { %15 = vsyncpa [#allocation4 + $0x1], 0  ;;  %s1372_s26 = smov 0   ;;  %s1374_s27 = smov 0  }
   0x4   :  { %s1376_s28 = smov 0   ;;  %s1378_s29 = smov 0  }
   0x5 LB: > { %s1393_s0 = sadd.s32 4294967295, %s1323_s29   ;;  %s1093_s30 = sadd.s32 4294967294, %s1323_s29   ;;  %s1323_s29 = sphi %s1378_s29, %s1653_s29   ;;  %s1319_s28 = sphi %s1376_s28, %s1652_s28   ;;  %s1315_s27 = sphi %s1374_s27, %s1651_s27   ;;  %s1311_s26 = sphi %s1372_s26, %s1650_s26  }
   0x6   : > { %s1397_s8 = sadd.s32 1, %s1323_s29   ;;  %s180_s9 = sadd.s32 1, %s1319_s28 }
   0x7   : > { %s177_s10 = ssub.s32 %s1323_s29, %s1397_s8  ;;  %p190_p0 = scmp.ne.s32.totalorder %s1319_s28, %s1315_s27 }
   0x8   : > { %p178_p1 = scmp.eq.s32.totalorder %s177_s10, 0  ;;  %p191_p2 = scmp.eq.s32.totalorder %s1393_s0, 1 }
   0x9   : > { %p196_p3 = scmp.ne.s32.totalorder %s1315_s27, %s1311_s26  ;;  %p197_p4 = scmp.eq.s32.totalorder %s1093_s30, 1 }
   0xa   : > { %s1408_s11 = scalar_select %p178_p1, %s1319_s28, %s180_s9  }
   0xb   : > { %p1410_p5 = por %p191_p2, %p190_p0  ;;  %p1414_p6 = por %p197_p4, %p196_p3 }
   0xc   : > { %p1096_p7 = scmp.ge.s32.totalorder %s1323_s29, 1  ;;  %p242_p8 = scmp.lt.s32.totalorder %s1323_s29, 3 }
   0xe   : > { %p243_p9 = pnand %p1096_p7, %p242_p8 }
   0xf   : > { %s1098_s14 = sshll.u32 (!%p243_p9), %s1393_s0, 1  ;;  %v283_v0 = vlaneseq (!%p243_p9)  ;;  %v1325_v1 = vmov (!%p243_p9), 0   ;;  %v1233_v17 = vld [vmem:[%s1643_s3] sm:$0xff] (!%p243_p9)   ;;  %v1326_v18 = vmov (!%p243_p9), 1.0|1.0   ;;  %v1239_v19 = vld [vmem:[%s1643_s3 + $0x18] sm:$0xff] (!%p243_p9)  }
  0x10   : > { %246 = sbr.rel (%p243_p9) target bundleno = 854 (0x356), region = 48  ;;  %p275_p10 = scmp.lt.s32.totalorder (!%p243_p9), %s1098_s14, 3  ;;  %467 = vmatprep.mubr.bf16.mxu0 (!%p243_p9), %v1325_v1  ;;  %497 = vmatprep.mubr.bf16.mxu1 (!%p243_p9), %v1325_v1  ;;  %vm410_vm10 = vcmask (!%p243_p9), 130048   ;;  %v1234_v20 = vld [vmem:[%s1643_s3 + $0x8] sm:$0xff] (!%p243_p9)   ;;  %v1241_v21 = vld [vmem:[%s1643_s3 + $0x20] sm:$0xff] (!%p243_p9)   ;;  %v1235_v22 = vld [vmem:[%s1643_s3 + $0x10] sm:$0xff] (!%p243_p9)  }
  0x11   : > { %v1424_v2 = vshrl.u32 (!%p243_p9), %v283_v0, 7  ;;  %1231 = vset.pattern.permute.xlu0 (!%p243_p9), %v1325_v1  ;;  %1232 = vset.pattern.permute.xlu1 (!%p243_p9), %v1325_v1  ;;  %v1243_v23 = vld [vmem:[%s1643_s3 + $0x28] sm:$0xff] (!%p243_p9)   ;;  %v1236_v24 = vld [vmem:[%s1642_s2] sm:$0xff] (!%p243_p9)   ;;  %v1245_v25 = vld [vmem:[%s1643_s3 + $0x30] sm:$0xff] (!%p243_p9)   ;;  %vm826_vm13 = vcmask (!%p243_p9), 523264   ;;  %s725_s17 = sld [smem:[#allocation2]] (!%p243_p9) }
  0x12   : > { %v1237_v26 = vld [vmem:[%s1642_s2 + $0x8] sm:$0xff] (!%p243_p9)   ;;  %v1247_v27 = vld [vmem:[%s1643_s3 + $0x38] sm:$0xff] (!%p243_p9)   ;;  %v1238_v28 = vld [vmem:[%s1642_s2 + $0x10] sm:$0xff] (!%p243_p9)   ;;  %s1154_s20 = sshll.u32 (!%p243_p9), %s1393_s0, 5  ;;  %vm1016_vm14 = vcmp.lt.s32.totalorder (!%p243_p9), %v283_v0, 256  ;;  %s1328_s0 = smov (!%p243_p9), [#allocation3]  }
  0x13   : > { %v314_v3 = vsub.s32 (!%p243_p9), 1, %v1424_v2  ;;  %v318_v4 = vsub.s32 (!%p243_p9), 3, %v1424_v2  ;;  %v288_v5 = vsub.s32 (!%p243_p9), 0, %v1424_v2  ;;  %v292_v6 = vsub.s32 (!%p243_p9), 2, %v1424_v2  ;;  %v1240_v29 = vld [vmem:[%s1642_s2 + $0x18] sm:$0xff] (!%p243_p9)   ;;  %v1242_v30 = vld [vmem:[%s1642_s2 + $0x20] sm:$0xff] (!%p243_p9)   ;;  %s1598_s25 = scalar_lea.hbm (!%p243_p9), %s1647_s7, %s1154_s20 }
  0x14   : > { %v285_v8 = vadd.s32 (!%p243_p9), 8, %v1424_v2  ;;  %v1244_v31 = vld [vmem:[%s1642_s2 + $0x28] sm:$0xff] (!%p243_p9)   ;;  %v1246_v32 = vld [vmem:[%s1642_s2 + $0x30] sm:$0xff] (!%p243_p9)   ;;  %v1248_v33 = vld [vmem:[%s1642_s2 + $0x38] sm:$0xff] (!%p243_p9)   ;;  %s1265_s10 = sshll.u32 (!%p243_p9), %s1328_s0, 4  ;;  %s1266_s10 = int_to_ptr.vmem [resolvable:$false] %s1265_s10 }
  0x15   : > { %v758_v34 = vld [vmem:[%s1645_s5] sm:$0xff] (!%p243_p9)  ;;  %v760_v35 = vld [vmem:[%s1645_s5 + $0x10] sm:$0xff] (!%p243_p9)  ;;  %v759_v36 = vld [vmem:[%s1645_s5 + $0x8] sm:$0xff] (!%p243_p9) }
  0x16   : > { %768 = vperm.xlu0 (!%p243_p9), %1231, %v758_v34   ;;  %778 = vperm.xlu1 (!%p243_p9), %1232, %v760_v35   ;;  %v761_v37 = vld [vmem:[%s1645_s5 + $0x18] sm:$0xff] (!%p243_p9)  ;;  %v762_v38 = vld [vmem:[%s1645_s5 + $0x20] sm:$0xff] (!%p243_p9)  ;;  %v763_v39 = vld [vmem:[%s1645_s5 + $0x28] sm:$0xff] (!%p243_p9) }
  0x17   : > { %s1655_s14 = smov (!%p275_p10, %s1098_s14), 3  ;;  %v764_v41 = vld [vmem:[%s1645_s5 + $0x30] sm:$0xff]  ;;  %v765_v42 = vld [vmem:[%s1645_s5 + $0x38] sm:$0xff] }
  0x18   : > { %s1099_s15 = sshll.u32 %s1655_s14, 1  ;;  %s1267_s14 = scalar_lea.vmem %s1266_s10, 64 }
  0x19   : > { %s278_s18 = scalar_lea.vmem %s1641_s1, %s1099_s15 }
  0x1a   : > { %v282_v7 = vld [vmem:[%s278_s18] sm:$0xf]  ;;  %773 = vperm.xlu0 %1231, %v759_v36   ;;  %783 = vperm.xlu1 %1232, %v761_v37   ;;  %s271_s18 = sand.u32 1, %s1315_s27  }
  0x1b   : > { %v319_v9 = vrot.slane %v282_v7, %v318_v4  ;;  %v315_v10 = vrot.slane %v282_v7, %v314_v3  ;;  %v293_v11 = vrot.slane %v282_v7, %v292_v6  ;;  %v289_v12 = vrot.slane %v282_v7, %v288_v5  ;;  %s1097_s19 = sshll.u32 %s271_s18, 1  ;;  %s1020_s30 = scalar_lea.sflag [#allocation4], %s271_s18 }
  0x1c   : > { %s273_s21 = scalar_lea.vmem [#allocation3], %s1097_s19 }
  0x1d   : > { %v327_v13 = vrot.slane %v319_v9, %v314_v3  ;;  %v323_v14 = vrot.slane %v315_v10, %v314_v3  ;;  %v301_v15 = vrot.slane %v293_v11, %v288_v5  ;;  %v297_v16 = vrot.slane %v289_v12, %v288_v5  ;;  %s1034_s22 = sshll.u32 %s273_s21, 4  ;;  %s1600_s22 = int_to_ptr.vmem [resolvable:$true] %s1034_s22 }
  0x1e   : > { %788 = vperm.xlu0 %1231, %v762_v38   ;;  %793 = vperm.xlu1 %1232, %v763_v39   ;;  %s1261_s9 = scalar_lea.vmem %s1600_s22, 32  ;;  %p1268_p0 = scmp.lt.s32.totalorder %s1600_s22, %s1266_s10 }
  0x1f   : > { %vm329_vm0 = vcmp.eq.s32.totalorder %v1424_v2, %v327_v13  ;;  %vm331_vm1 = vcmp.eq.s32.totalorder %v285_v8, %v327_v13  ;;  %vm328_vm2 = vcmp.eq.s32.totalorder %v1424_v2, %v323_v14  ;;  %vm330_vm3 = vcmp.eq.s32.totalorder %v285_v8, %v323_v14  ;;  %p1262_p11 = scmp.ne.s32.totalorder %s1600_s22, %s1261_s9  ;;  %p1269_p1 = scmp.lt.s32.totalorder %s1267_s14, %s1261_s9 }
  0x20   : > { %vm1108_vm4 = vmpackc.low %vm331_vm1, %vm329_vm0  ;;  %vm303_vm5 = vcmp.eq.s32.totalorder %v1424_v2, %v301_v15  ;;  %vm305_vm6 = vcmp.eq.s32.totalorder %v285_v8, %v301_v15  ;;  %vm302_vm7 = vcmp.eq.s32.totalorder %v1424_v2, %v297_v16  ;;  %vm304_vm8 = vcmp.eq.s32.totalorder %v285_v8, %v297_v16 }
  0x21   : > { %1109 = vmatprep.subr.msk.bf16.mxu0 %vm1108_vm4, %v1326_v18  ;;  %vm1110_vm9 = vmpackc.low %vm330_vm3, %vm328_vm2  ;;  %1155 = vmatprep.subr.msk.bf16.mxu1 %vm1108_vm4, %v1326_v18  ;;  %p1263_p12 = pnand %p1262_p11, %p1410_p5  ;;  %p1270_p2 = por %p1269_p1, %p1268_p0 }
  0x22   : > { %1111 = vmatpush1.bf16.msk.msra.mxu0 %vm1110_vm9, %v1326_v18  ;;  %vm1128_vm11 = vmpackc.low %vm305_vm6, %vm303_vm5  ;;  %1156 = vmatpush1.bf16.msk.msra.mxu1 %vm1110_vm9, %v1326_v18 }
  0x23   : > { %1129 = vmatprep.subr.msk.bf16.mxu0 %vm1128_vm11, %v1326_v18  ;;  %vm1130_vm12 = vmpackc.low %vm304_vm8, %vm302_vm7  ;;  %798 = vperm.xlu0 %1231, %v764_v41   ;;  %p1264_p13 = pneg %p1263_p12 }
  0x24   : > { %803 = vperm.xlu1 %1232, %v765_v42  }
  0x25   : > { %1112 = vmatmul.mubr.msk.bf16.vlgmr.msra.gmra.mrb[0].mxu0 %vm410_vm10, %v1233_v17  ;;  %1115 = vmatmul.mubr.msk.bf16.vlgmr.msra.gmra.mrb[0].mxu1 %vm410_vm10, %v1239_v19  ;;  %p1271_p3 = pnand %p1270_p2, %p1264_p13 }
  0x26   : > { %477 = vmatprep.mubr.bf16.mxu0 %v1325_v1  ;;  %1131 = vmatpush1.bf16.msk.msra.mxu0 %vm1130_vm12, %v1326_v18 }
  0x27   : > { %507 = vmatprep.mubr.bf16.mxu1 %v1325_v1 }
  0x2d   : > { %1113 = vmatmul.mubr.msk.bf16.gmra.mrb[4].mxu0 %vm410_vm10, %v1234_v20  ;;  %1116 = vmatmul.mubr.msk.bf16.gmra.mrb[4].mxu1 %vm410_vm10, %v1241_v21 }
  0x2e   : > { %487 = vmatprep.mubr.bf16.mxu0 %v1325_v1  ;;  %517 = vmatprep.mubr.bf16.mxu1 %v1325_v1 }
  0x35   : > { %1114 = vmatmul.mubr.msk.bf16.gmra.mrb[8].mxu0 %vm410_vm10, %v1235_v22  ;;  %1117 = vmatmul.mubr.msk.bf16.gmra.mrb[8].mxu1 %vm410_vm10, %v1243_v23 }
  0x36   : > { %644 = vmatprep.mubr.bf16.mxu0 %v1325_v1  ;;  %527 = vmatprep.mubr.bf16.mxu1 %v1325_v1 }
  0x3d   : > { %1132 = vmatmul.mubr.msk.bf16.vlgmr.msra.gmra.mrb[0].mxu0 %vm410_vm10, %v1236_v24  ;;  %1118 = vmatmul.mubr.msk.bf16.gmra.mrb[12].mxu1 %vm410_vm10, %v1245_v25 }
  0x3e   : > { %654 = vmatprep.mubr.bf16.mxu0 %v1325_v1  ;;  %537 = vmatprep.mubr.bf16.mxu1 %v1325_v1 }
  0x45   : > { %1133 = vmatmul.mubr.msk.bf16.gmra.mrb[4].mxu0 %vm410_vm10, %v1237_v26  ;;  %1119 = vmatmul.mubr.msk.bf16.gmra.mrb[16].mxu1 %vm410_vm10, %v1247_v27 }
  0x46   : > { %664 = vmatprep.mubr.bf16.mxu0 %v1325_v1  ;;  %871 = vmatprep.mubr.bf16.mxu1 %v1325_v1 }
  0x4d   : > { %1134 = vmatmul.mubr.msk.bf16.gmra.mrb[8].mxu0 %vm410_vm10, %v1238_v28 }
  0x4e   : > { %674 = vmatprep.mubr.bf16.mxu0 %v1325_v1 }
  0x55   : > { %1135 = vmatmul.mubr.msk.bf16.gmra.mrb[12].mxu0 %vm410_vm10, %v1240_v29 }
  0x56   : > { %684 = vmatprep.mubr.bf16.mxu0 %v1325_v1 }
  0x5d   : > { %1136 = vmatmul.mubr.msk.bf16.gmra.mrb[16].mxu0 %vm410_vm10, %v1242_v30 }
  0x5e   : > { %694 = vmatprep.mubr.bf16.mxu0 %v1325_v1 }
  0x65   : > { %1137 = vmatmul.mubr.msk.bf16.gmra.mrb[20].mxu0 %vm410_vm10, %v1244_v31 }
  0x66   : > { %704 = vmatprep.mubr.bf16.mxu0 %v1325_v1 }
  0x6d   : > { %1138 = vmatmul.mubr.msk.bf16.gmra.mrb[24].mxu0 %vm410_vm10, %v1246_v32 }
  0x6e   : > { %714 = vmatprep.mubr.bf16.mxu0 %v1325_v1 }
  0x75   : > { %1139 = vmatmul.mubr.msk.bf16.gmra.mrb[28].mxu0 %vm410_vm10, %v1248_v33 }
  0xf8   : > { %v499_v40 = vpop.f32.mrb[0].mxu1 }
  0xf9   : > { %v501_v43 = vpop.f32.mrb[1].mxu1 }
  0xfa   : > { %v503_v44 = vpop.f32.mrb[2].mxu1 }
  0xfb   : > { %v505_v45 = vpop.f32.mrb[3].mxu1 }
 0x100   : > { %v509_v46 = vpop.f32.mrb[4].mxu1 }
 0x101   : > { %v511_v47 = vpop.f32.mrb[5].mxu1 }
 0x102   : > { %v513_v48 = vpop.f32.mrb[6].mxu1 }
 0x103   : > { %v515_v49 = vpop.f32.mrb[7].mxu1 }
 0x108   : > { %v519_v50 = vpop.f32.mrb[8].mxu1 }
 0x109   : > { %v521_v51 = vpop.f32.mrb[9].mxu1 }
 0x10a   : > { %v523_v52 = vpop.f32.mrb[10].mxu1 }
 0x10b   : > { %v525_v53 = vpop.f32.mrb[11].mxu1 }
 0x110   : > { %v646_v54 = vpop.f32.mrb[0].mxu0  ;;  %v529_v55 = vpop.f32.mrb[12].mxu1 }
 0x111   : > { %v648_v56 = vpop.f32.mrb[1].mxu0  ;;  %v531_v57 = vpop.f32.mrb[13].mxu1 }
 0x112   : > { %v650_v58 = vpop.f32.mrb[2].mxu0  ;;  %v533_v59 = vpop.f32.mrb[14].mxu1 }
 0x113   : > { %v652_v60 = vpop.f32.mrb[3].mxu0  ;;  %v535_v61 = vpop.f32.mrb[15].mxu1 }
 0x118   : > { %v656_v62 = vpop.f32.mrb[4].mxu0  ;;  %v1543_v63 = vpop.f32.mrb[16].mxu1 }
 0x119   : > { %v658_v3 = vpop.f32.mrb[5].mxu0  ;;  %v1545_v4 = vpop.f32.mrb[17].mxu1 }
 0x11a   : > { %v660_v5 = vpop.f32.mrb[6].mxu0  ;;  %v1547_v6 = vpop.f32.mrb[18].mxu1 }
 0x11b   : > { %v662_v7 = vpop.f32.mrb[7].mxu0  ;;  %v1549_v8 = vpop.f32.mrb[19].mxu1 }
 0x120   : > { %v666_v9 = vpop.f32.mrb[8].mxu0 }
 0x121   : > { %v668_v10 = vpop.f32.mrb[9].mxu0 }
 0x122   : > { %v670_v11 = vpop.f32.mrb[10].mxu0 }
 0x123   : > { %v672_v12 = vpop.f32.mrb[11].mxu0 }
 0x128   : > { %v676_v13 = vpop.f32.mrb[12].mxu0 }
 0x129   : > { %v1551_v14 = vadd.f32 %v676_v13, %v499_v40  ;;  %v678_v15 = vpop.f32.mrb[13].mxu0 }
 0x12a   : > { %v1553_v16 = vadd.f32 %v678_v15, %v501_v43  ;;  %v680_v17 = vpop.f32.mrb[14].mxu0 }
 0x12b   : > { %v1555_v18 = vadd.f32 %v680_v17, %v503_v44  ;;  %v682_v19 = vpop.f32.mrb[15].mxu0 }
 0x12c   : > { %v1557_v20 = vadd.f32 %v682_v19, %v505_v45 }
 0x130   : > { %v686_v21 = vpop.f32.mrb[16].mxu0 }
 0x131   : > { %v687_v22 = vadd.f32 %v686_v21, %v509_v46  ;;  %v688_v23 = vpop.f32.mrb[17].mxu0 }
 0x132   : > { %v689_v24 = vadd.f32 %v688_v23, %v511_v47  ;;  %v690_v25 = vpop.f32.mrb[18].mxu0 }
 0x133   : > { %v726_v26 = vmax.f32 %v646_v54, %v687_v22  ;;  %v691_v27 = vadd.f32 %v690_v25, %v513_v48  ;;  %v692_v28 = vpop.f32.mrb[19].mxu0 }
 0x134   : > { %v727_v29 = vmax.f32 %v648_v56, %v689_v24  ;;  %v693_v30 = vadd.f32 %v692_v28, %v515_v49 }
 0x135   : > { %v728_v31 = vmax.f32 %v650_v58, %v691_v27 }
 0x136   : > { %v729_v32 = vmax.f32 %v652_v60, %v693_v30 }
 0x137   : > { %v750_v33 = vpack.c.bf16 %v728_v31, %v726_v26 }
 0x138   : > { %v696_v34 = vpop.f32.mrb[20].mxu0  ;;  %v751_v35 = vpack.c.bf16 %v729_v32, %v727_v29  ;;  %v779_v29 = vpop.permute.xlu1 %778 }
 0x139   : > { %v697_v36 = vadd.f32 %v696_v34, %v519_v50  ;;  %v698_v37 = vpop.f32.mrb[21].mxu0 }
 0x13a   : > { %v699_v38 = vadd.f32 %v698_v37, %v521_v51  ;;  %v700_v39 = vpop.f32.mrb[22].mxu0  ;;  %839 = vmatprep.subr.bf16.mxu1 %v751_v35 }
 0x13b   : > { %v730_v40 = vmax.f32 %v656_v62, %v697_v36  ;;  %v701_v41 = vadd.f32 %v700_v39, %v523_v52  ;;  %v702_v42 = vpop.f32.mrb[23].mxu0  ;;  %840 = vmatpush1.bf16.msra.mxu1 %v750_v33 }
 0x13c   : > { %v731_v43 = vmax.f32 %v658_v3, %v699_v38  ;;  %v703_v44 = vadd.f32 %v702_v42, %v525_v53  ;;  %v784_v39 = vpop.permute.xlu1 %783 }
 0x13d   : > { %v732_v45 = vmax.f32 %v660_v5, %v701_v41 }
 0x13e   : > { %v733_v46 = vmax.f32 %v662_v7, %v703_v44 }
 0x13f   : > { %v752_v47 = vpack.c.bf16 %v732_v45, %v730_v40 }
 0x140   : > { %v706_v48 = vpop.f32.mrb[24].mxu0  ;;  %v753_v49 = vpack.c.bf16 %v733_v46, %v731_v43 }
 0x141   : > { %v707_v54 = vadd.f32 %v706_v48, %v529_v55  ;;  %v708_v56 = vpop.f32.mrb[25].mxu0 }
 0x142   : > { %v709_v58 = vadd.f32 %v708_v56, %v531_v57  ;;  %v710_v60 = vpop.f32.mrb[26].mxu0  ;;  %841 = vmatprep.subr.bf16.mxu1 %v753_v49 }
 0x143   : > { %v734_v50 = vmax.f32 %v666_v9, %v707_v54  ;;  %v711_v51 = vadd.f32 %v710_v60, %v533_v59  ;;  %v712_v13 = vpop.f32.mrb[27].mxu0  ;;  %842 = vmatpush1.bf16.msra.mxu1 %v752_v47 }
 0x144   : > { %v735_v62 = vmax.f32 %v668_v10, %v709_v58  ;;  %v713_v52 = vadd.f32 %v712_v13, %v535_v61 }
 0x145   : > { %v736_v15 = vmax.f32 %v670_v11, %v711_v51  ;;  %v794_v51 = vpop.permute.xlu1 %793 }
 0x146   : > { %v737_v17 = vmax.f32 %v672_v12, %v713_v52 }
 0x147   : > { %v754_v3 = vpack.c.bf16 %v736_v15, %v734_v50 }
 0x148   : > { %v716_v53 = vpop.f32.mrb[28].mxu0  ;;  %v755_v5 = vpack.c.bf16 %v737_v17, %v735_v62 }
 0x149   : > { %v717_v7 = vadd.f32 %v716_v53, %v1543_v63  ;;  %v718_v19 = vpop.f32.mrb[29].mxu0 }
 0x14a   : > { %v719_v55 = vadd.f32 %v718_v19, %v1545_v4  ;;  %v720_v21 = vpop.f32.mrb[30].mxu0  ;;  %843 = vmatprep.subr.bf16.mxu1 %v755_v5  ;;  %v1249_v4 = vld [vmem:[%s1644_s4] sm:$0xff]  }
 0x14b   : > { %v738_v57 = vmax.f32 %v1551_v14, %v717_v7  ;;  %v721_v59 = vadd.f32 %v720_v21, %v1547_v6  ;;  %v722_v9 = vpop.f32.mrb[31].mxu0  ;;  %844 = vmatpush1.bf16.msra.mxu1 %v754_v3  ;;  %v1250_v6 = vld [vmem:[%s1644_s4 + $0x8] sm:$0xff]   ;;  %v1252_v14 = vld [vmem:[%s1644_s4 + $0x18] sm:$0xff]  }
 0x14c   : > { %v739_v61 = vmax.f32 %v1553_v16, %v719_v55  ;;  %v723_v10 = vadd.f32 %v722_v9, %v1549_v8  ;;  %v1251_v8 = vld [vmem:[%s1644_s4 + $0x10] sm:$0xff]   ;;  %v769_v16 = vpop.permute.xlu0 %768 }
 0x14d   : > { %v740_v11 = vmax.f32 %v1555_v18, %v721_v59 }
 0x14e   : > { %v741_v12 = vmax.f32 %v1557_v20, %v723_v10 }
 0x14f   : > { %v756_v63 = vpack.c.bf16 %v740_v11, %v738_v57 }
 0x150   : > { %v757_v22 = vpack.c.bf16 %v741_v12, %v739_v61  ;;  %v774_v18 = vpop.permute.xlu0 %773  ;;  %v804_v61 = vpop.permute.xlu1 %803 }
 0x152   : > { %845 = vmatprep.subr.bf16.mxu1 %v757_v22 }
 0x153   : > { %846 = vmatpush1.bf16.msra.mxu1 %v756_v63 }
 0x154   : > { %v789_v54 = vpop.permute.xlu0 %788 }
 0x156   : > { %1144 = vmatmul.mubr.msk.bf16.vlgmr.msra.gmra.mrb[20].mxu1 %vm826_vm13, %v1249_v4 }
 0x157   : > { %881 = vmatprep.mubr.bf16.mxu1 %v1325_v1 }
 0x158   : > { %v799_v55 = vpop.permute.xlu0 %798 }
 0x15e   : > { %1145 = vmatmul.mubr.msk.bf16.gmra.mrb[24].mxu1 %vm826_vm13, %v1250_v6 }
 0x15f   : > { %891 = vmatprep.mubr.bf16.mxu1 %v1325_v1 }
 0x166   : > { %1146 = vmatmul.mubr.msk.bf16.gmra.mrb[28].mxu1 %vm826_vm13, %v1251_v8 }
 0x167   : > { %901 = vmatprep.mubr.bf16.mxu1 %v1325_v1 }
 0x16e   : > { %1147 = vmatmul.mubr.msk.bf16.gmra.mrb[32].mxu1 %vm826_vm13, %v1252_v14 }
 0x16f   : > { %972 = vmatprep.mubr.bf16.mxu1 %v1325_v1 }
 0x229   : > { %v873_v20 = vpop.f32.mrb[20].mxu1 }
 0x22a   : > { %v874_v23 = vadd.f32 %v873_v20, %v769_v16  ;;  %v875_v24 = vpop.f32.mrb[21].mxu1  ;;  %v928_v20 = vld [vmem:[%s1646_s6] sm:$0xf] }
 0x22b   : > { %v876_v25 = vadd.f32 %v875_v24, %v769_v16  ;;  %v877_v26 = vpop.f32.mrb[22].mxu1 }
 0x22c   : > { %v878_v27 = vadd.f32 %v877_v26, %v774_v18  ;;  %v879_v28 = vpop.f32.mrb[23].mxu1  ;;  %v912_v31 = vmax.f32 %v874_v23, 0.0  ;;  %v981_v23 = vstv %s725_s17 }
 0x22d   : > { %v880_v30 = vadd.f32 %v879_v28, %v774_v18  ;;  %v913_v33 = vmax.f32 %v876_v25, 0.0 }
 0x22e   : > { %v914_v32 = vmax.f32 %v878_v27, 0.0 }
 0x22f   : > { %v915_v34 = vmax.f32 %v880_v30, 0.0 }
 0x230   : > { %v929_v35 = vpack.c.bf16 %v914_v32, %v912_v31 }
 0x231   : > { %v930_v36 = vpack.c.bf16 %v915_v34, %v913_v33  ;;  %v883_v37 = vpop.f32.mrb[24].mxu1 }
 0x232   : > { %v884_v38 = vadd.f32 %v883_v37, %v779_v29  ;;  %v885_v1 = vpop.f32.mrb[25].mxu1 }
 0x233   : > { %v886_v40 = vadd.f32 %v885_v1, %v779_v29  ;;  %v887_v41 = vpop.f32.mrb[26].mxu1  ;;  %940 = vmatprep.subr.bf16.mxu1 %v930_v36 }
 0x234   : > { %v888_v42 = vadd.f32 %v887_v41, %v784_v39  ;;  %v889_v43 = vpop.f32.mrb[27].mxu1  ;;  %941 = vmatpush1.bf16.msra.mxu1 %v929_v35  ;;  %v916_v45 = vmax.f32 %v884_v38, 0.0  ;;  %v1327_v38 = vmov 1966171168  }
 0x235   : > { %v890_v44 = vadd.f32 %v889_v43, %v784_v39  ;;  %v917_v47 = vmax.f32 %v886_v40, 0.0  ;;  %v1000_v1 = vunpack.c.l.s4 %v1327_v38 }
 0x236   : > { %v918_v46 = vmax.f32 %v888_v42, 0.0 }
 0x237   : > { %v919_v48 = vmax.f32 %v890_v44, 0.0  ;;  %v1001_v39 = vunpack.c.0.s8 %v1000_v1 }
 0x238   : > { %v931_v49 = vpack.c.bf16 %v918_v46, %v916_v45 }
 0x239   : > { %v932_v56 = vpack.c.bf16 %v919_v48, %v917_v47  ;;  %v893_v58 = vpop.f32.mrb[28].mxu1  ;;  %v1004_v41 = vsub.s32 %v1001_v39, %v1424_v2 }
 0x23a   : > { %v894_v60 = vadd.f32 %v893_v58, %v789_v54  ;;  %v895_v50 = vpop.f32.mrb[29].mxu1 }
 0x23b   : > { %v896_v13 = vadd.f32 %v895_v50, %v789_v54  ;;  %v897_v62 = vpop.f32.mrb[30].mxu1  ;;  %942 = vmatprep.subr.bf16.mxu1 %v932_v56 }
 0x23c   : > { %v898_v52 = vadd.f32 %v897_v62, %v794_v51  ;;  %v899_v15 = vpop.f32.mrb[31].mxu1  ;;  %943 = vmatpush1.bf16.msra.mxu1 %v931_v49  ;;  %v920_v3 = vmax.f32 %v894_v60, 0.0 }
 0x23d   : > { %v900_v17 = vadd.f32 %v899_v15, %v794_v51  ;;  %v921_v5 = vmax.f32 %v896_v13, 0.0 }
 0x23e   : > { %v922_v53 = vmax.f32 %v898_v52, 0.0 }
 0x23f   : > { %v923_v7 = vmax.f32 %v900_v17, 0.0 }
 0x240   : > { %v933_v19 = vpack.c.bf16 %v922_v53, %v920_v3 }
 0x241   : > { %v934_v21 = vpack.c.bf16 %v923_v7, %v921_v5  ;;  %v903_v57 = vpop.f32.mrb[32].mxu1 }
 0x242   : > { %v904_v59 = vadd.f32 %v903_v57, %v799_v55  ;;  %v905_v9 = vpop.f32.mrb[33].mxu1 }
 0x243   : > { %v906_v10 = vadd.f32 %v905_v9, %v799_v55  ;;  %v907_v11 = vpop.f32.mrb[34].mxu1  ;;  %944 = vmatprep.subr.bf16.mxu1 %v934_v21 }
 0x244   : > { %v908_v12 = vadd.f32 %v907_v11, %v804_v61  ;;  %v909_v63 = vpop.f32.mrb[35].mxu1  ;;  %945 = vmatpush1.bf16.msra.mxu1 %v933_v19  ;;  %v924_v4 = vmax.f32 %v904_v59, 0.0 }
 0x245   : > { %v910_v22 = vadd.f32 %v909_v63, %v804_v61  ;;  %v925_v8 = vmax.f32 %v906_v10, 0.0 }
 0x246   : > { %v926_v6 = vmax.f32 %v908_v12, 0.0 }
 0x247   : > { %v927_v14 = vmax.f32 %v910_v22, 0.0 }
 0x248   : > { %v935_v16 = vpack.c.bf16 %v926_v6, %v924_v4 }
 0x249   : > { %v936_v18 = vpack.c.bf16 %v927_v14, %v925_v8 }
 0x24b   : > { %946 = vmatprep.subr.bf16.mxu1 %v936_v18 }
 0x24c   : > { %947 = vmatpush1.bf16.msra.mxu1 %v935_v16 }
 0x24f   : > { %1148 = vmatmul.mubr.msk.bf16.vlgmr.msra.gmra.mrb[36].mxu1 %vm826_vm13, %v928_v20 }
 0x322   : > { %v974_v24 = vpop.f32.mrb[36].mxu1 }
 0x323   : > { %v982_v25 = vadd.f32 %v981_v23, %v974_v24  ;;  %v976_v26 = vpop.f32.mrb[37].mxu1 }
 0x324   : > { %v983_v27 = vadd.f32 %v981_v23, %v976_v26  ;;  %v978_v28 = vpop.f32.mrb[38].mxu1 }
 0x325   : > { %v984_v29 = vsub.f32 0.0, %v982_v25  ;;  %v979_v30 = vpop.f32.mrb[39].mxu1 }
 0x326   : > { %v985_v31 = vsub.f32 0.0, %v983_v27 }
 0x327   : > { %v986_v32 = vmul.f32 1.442695, %v984_v29 }
 0x328   : > { %v988_v33 = vmul.f32 1.442695, %v985_v31 }
 0x329   : > { %1253 = vpow2.f32 %v986_v32 }
 0x32a   : > { %1255 = vpow2.f32 %v988_v33 }
 0x333   : > { %v1254_v34 = vpop.eup %1253 }
 0x334   : > { %v1256_v35 = vpop.eup %1255  ;;  %v990_v36 = vadd.f32 1.0, %v1254_v34 }
 0x335   : > { %v991_v37 = vadd.f32 1.0, %v1256_v35 }
 0x336   : > { %1257 = vrcp.f32 %v990_v36 }
 0x337   : > { %1259 = vrcp.f32 %v991_v37 }
 0x340   : > { %v1258_v40 = vpop.eup %1257 }
 0x341   : > { %v1260_v42 = vpop.eup %1259 }
 0x342   : > { %v998_v43 = vcombine.low %v1258_v40, %v1260_v42 }
 0x344   : > { %v1005_v44 = vrot.slane %v998_v43, %v1004_v41 }
 0x346   : > { %v1012_v45 = vrot.slane %v1005_v44, %v1004_v41 }
 0x348   : > { %1018 = vst.msk [vmem:[%s273_s21] sm:$0x3] %vm1016_vm14, %v1012_v45 }
 0x349   : > { %1274 = shalt.err (!%p1271_p3)
}
 0x34a   : > { %s1275_s15 = scalar_lea.hbm %s1598_s25, 32  ;;  %s1279_s18 = scalar_lea.hbm %s1647_s7, 64 }
 0x34b   : > { %p1276_p4 = scmp.ne.s32.totalorder %s1598_s25, %s1275_s15  ;;  %p1280_p9 = scmp.lt.u32.totalorder %s1598_s25, %s1647_s7 }
 0x34c   : > { %p1281_p10 = scmp.lt.u32.totalorder %s1279_s18, %s1275_s15  ;;  %p1283_p12 = scmp.lt.u32.totalorder %s1275_s15, %s1598_s25 }
 0x34d   : > { %p1277_p7 = pnand %p1276_p4, %p1410_p5 }
 0x34e   : > { %p1282_p11 = por %p1281_p10, %p1280_p9 }
 0x34f   : > { %p1278_p8 = pneg %p1277_p7 }
 0x350   : > { %p1284_p13 = por %p1283_p12, %p1282_p11 }
 0x352   : > { %p1285_p0 = pnand %p1284_p13, %p1278_p8 }
 0x354   : > { %1288 = shalt.err (!%p1285_p0)
}
 0x355   : > { %1189 = dma.vmem_to_hbm [thread:$0]  (%p1410_p5), %s1600_s22, 32, %s1598_s25, %s1020_s30  }
 0x356 PF: > { %p1195_p1 = scmp.ge.s32.totalorder %s1323_s29, 2  ;;  %s1046_s21 = sand.u32 1, %s1311_s26  }
 0x357   : > { %s1047_s23 = scalar_lea.sflag [#allocation4], %s1046_s21 }
 0x358   : > { %p1192_p2 = pnand %p1195_p1, %p1414_p6 }
 0x35a   : > { %1306 = dma.done.wait (!%p1192_p2), %s1047_s23, 32  }
 0x35b   : > { %1308 = vsyncadd (!%p1192_p2), %s1047_s23, 4294967264  ;;  %p18_p3 = scmp.ge.s32.totalorder %s1397_s8, 4   ;;  %s1650_s26 = smov %s1315_s27 }
 0x35c   : > { %s1651_s27 = smov %s1319_s28  ;;  %s1652_s28 = smov %s1408_s11 }
 0x35d   : > { %s1653_s29 = smov %s1397_s8  ;;  %20 = sbr.rel (!%p18_p3) target bundleno = 5 (0x5), region = 83 }
 0x364   :  { %1052 = vsyncpa [#allocation4], 1 }
 0x365   :  { %1054 = vsyncpa [#allocation4 + $0x1], 1 }

</bundles_post_ra>
